<compile_context>
chip_gen: v6e
topology: v6e:2x2x1
jax: 0.10.0
libtpu: 0.0.40
codegen_flags: <defaults>
</compile_context>

<pallas_src>
import functools
import math

import jax
import jax.numpy as jnp
from jax.experimental import pallas as pl
from jax.experimental.pallas import tpu as pltpu


def _conv_bn_relu_kernel(x_ref, w_ref, scale_ref, bias_ref, o_ref, *, compute_dtype):
    # x_ref:     (B_blk, Cin, ts)        activation tiles, lane dim = spatial
    # w_ref:     (cout_tile, Cin)        conv weight (compute_dtype, e.g. bf16)
    # scale_ref: (cout_tile, 1)  f32     gamma / sqrt(var + eps)
    # bias_ref:  (cout_tile, 1)  f32     beta - mean * scale
    # o_ref:     (B_blk, cout_tile, ts)
    w = w_ref[...]
    scale = scale_ref[...]
    bias = bias_ref[...]
    for b in range(x_ref.shape[0]):  # B_blk is small & static -> unrolled
        x = x_ref[b].astype(compute_dtype)
        acc = jnp.dot(w, x, preferred_element_type=jnp.float32)      # MXU, f32 acc
        o_ref[b] = jnp.maximum(acc * scale + bias, 0.0).astype(o_ref.dtype)


def _round_up(x, m):
    return (x + m - 1) // m * m


def _vmem_capacity_bytes():
    try:
        return int(pltpu.get_tpu_info().vmem_capacity_bytes)
    except Exception:
        return 64 * 1024 * 1024  # conservative fallback (v7x per-TC VMEM)


def _plan(N, Cin, Cout, P, x_bytes, out_bytes, w_bytes, vmem_cap, target_lanes=2048):
    """Pick (B_blk, cout_tile, ts, vmem_limit) from the actual VMEM capacity."""
    # Never ask for the whole VMEM (leave headroom for Mosaic internal scratch;
    # critical on v7x's 64 MiB, generous on v5e/v6e's 128 MiB).
    stream_budget = (vmem_cap * 9) // 20      # ~45% for double-buffered streaming tiles
    weight_budget = vmem_cap // 8             # bound resident weight

    # --- Cout tiling: only when the whole weight would not fit its budget.
    if Cout * Cin * w_bytes <= weight_budget:
        cout_tile = Cout
    else:
        # 256-row slabs feed the 256x256 MXU on v6e/v7x (and are a multiple of
        # the v5e 128x128 MXU); weight is double-buffered when its index varies.
        cout_tile = max(256, ((weight_budget // 2) // (Cin * w_bytes)) // 256 * 256)
        cout_tile = min(cout_tile, Cout)
    n_cout = pl.cdiv(Cout, cout_tile)

    # Bytes streamed per spatial lane per step (double-buffered in + out).
    per_lane = 2 * (Cin * x_bytes + cout_tile * out_bytes)
    max_lanes = max(128, ((stream_budget // per_lane) // 128) * 128)

    P128 = _round_up(P, 128)
    if P128 <= min(target_lanes, max_lanes):
        ts = P                     # whole map per step (OK even if P % 128 != 0)
    else:
        ts = min(target_lanes, max_lanes)   # multiple of 128; last block is ragged
    n_sp = pl.cdiv(P, ts)

    # --- Batch blocking: amortize per-grid-step overhead for tiny feature maps.
    if n_sp == 1 and n_cout == 1:
        B_blk = max(1, min(N, target_lanes // P128,
                           stream_budget // (per_lane * P128)))
    else:
        B_blk = 1

    vmem_est = (B_blk * ts * per_lane                 # streaming in/out, double buffered
                + 2 * cout_tile * Cin * w_bytes       # weight (<= 2 buffers)
                + 4 * cout_tile * 4)                  # scale + bias
    vmem_limit = int(min((vmem_cap * 3) // 4,
                         max(vmem_est + (8 << 20), 32 << 20)))
    return B_blk, cout_tile, ts, vmem_limit


def conv_bn_relu(x_nchw, weight, gamma, beta, running_mean, running_var,
                 eps=1e-5, compute_dtype=jnp.bfloat16, out_dtype=None):
    """Fused 1x1 Conv2d(bias=False) + BatchNorm2d(eval stats) + ReLU.

    x_nchw: (N, Cin, H, W);  weight: (Cout, Cin, 1, 1) (PyTorch conv layout).
    Output dtype defaults to the input dtype.
    """
    N, Cin, H, W = x_nchw.shape
    Cout = weight.shape[0]
    P = H * W
    out_dtype = x_nchw.dtype if out_dtype is None else out_dtype

    # BN (inference) -> per-channel scale/bias, applied in the f32 epilogue.
    scale = (gamma.astype(jnp.float32) /
             jnp.sqrt(running_var.astype(jnp.float32) + eps))
    bias = beta.astype(jnp.float32) - running_mean.astype(jnp.float32) * scale
    scale2d = scale.reshape(Cout, 1)
    bias2d = bias.reshape(Cout, 1)
    w_mat = weight.reshape(Cout, Cin).astype(compute_dtype)  # one-time tiny cast

    # NCHW -> (N, Cin, H*W): pure reshape (H, W contiguous), no transpose pass.
    x3 = x_nchw.reshape(N, Cin, P)

    x_bytes = x3.dtype.itemsize
    w_bytes = jnp.dtype(compute_dtype).itemsize
    out_bytes = jnp.dtype(out_dtype).itemsize

    vmem_cap = _vmem_capacity_bytes()
    B_blk, cout_tile, ts, vmem_limit = _plan(
        N, Cin, Cout, P, x_bytes, out_bytes, w_bytes, vmem_cap)

    grid = (pl.cdiv(N, B_blk), pl.cdiv(Cout, cout_tile), pl.cdiv(P, ts))
    n_cout = grid[1]

    cost = pl.CostEstimate(
        flops=2 * N * P * Cin * Cout,
        transcendentals=0,
        bytes_accessed=(N * Cin * P * x_bytes + Cout * Cin * w_bytes
                        + N * Cout * P * out_bytes + 8 * Cout),
    )

    kernel = functools.partial(_conv_bn_relu_kernel, compute_dtype=compute_dtype)

    def _run(single_buffer_consts):
        const_kw = {}
        if single_buffer_consts:
            # Constant-index operands need only one VMEM buffer; frees headroom
            # for bigger streaming tiles (matters most on v7x's 64 MiB VMEM).
            const_kw = dict(pipeline_mode=pl.Buffered(1))
        in_specs = [
            pl.BlockSpec((B_blk, Cin, ts), lambda b, c, j: (b, 0, j)),
            pl.BlockSpec((cout_tile, Cin), lambda b, c, j: (c, 0), **const_kw),
            pl.BlockSpec((cout_tile, 1), lambda b, c, j: (c, 0), **const_kw),
            pl.BlockSpec((cout_tile, 1), lambda b, c, j: (c, 0), **const_kw),
        ]
        out_spec = pl.BlockSpec((B_blk, cout_tile, ts), lambda b, c, j: (b, c, j))
        return pl.pallas_call(
            kernel,
            out_shape=jax.ShapeDtypeStruct((N, Cout, P), out_dtype),
            grid_spec=pltpu.PrefetchScalarGridSpec(
                num_scalar_prefetch=0,
                grid=grid,
                in_specs=in_specs,
                out_specs=out_spec,
            ),
            compiler_params=pltpu.CompilerParams(
                dimension_semantics=("parallel", "parallel", "parallel"),
                vmem_limit_bytes=vmem_limit),
            cost_estimate=cost,
        )(x3, w_mat, scale2d, bias2d)

    if n_cout == 1:
        try:
            out3 = _run(single_buffer_consts=True)
        except Exception:
            # pipeline_mode=pl.Buffered(1) not supported by this jax build ->
            # fall back to default double-buffering (correctness identical).
            out3 = _run(single_buffer_consts=False)
    else:
        out3 = _run(single_buffer_consts=False)

    # (N, Cout, H*W) -> NCHW, a pure reshape.
    return out3.reshape(N, Cout, H, W)


def init_params(key, in_planes, out_planes, kernel_size=1):
    # Matches the PyTorch __init__:
    #   conv.weight ~ Normal(0, sqrt(2 / (k*k*out_planes))), bias=False
    #   bn.weight = 1, bn.bias = 0, running_mean = 0, running_var = 1
    n = kernel_size * kernel_size * out_planes
    std = math.sqrt(2.0 / n)
    weight = std * jax.random.normal(
        key, (out_planes, in_planes, kernel_size, kernel_size), jnp.float32)
    gamma = jnp.ones((out_planes,), jnp.float32)
    beta = jnp.zeros((out_planes,), jnp.float32)
    running_mean = jnp.zeros((out_planes,), jnp.float32)
    running_var = jnp.ones((out_planes,), jnp.float32)
    return weight, gamma, beta, running_mean, running_var


# TODO(synk): kernel_size > 1 / stride > 1 / padding > 0 would need an im2col
# (or halo-exchange) stage; only the default 1x1 / stride 1 / padding 0
# configuration of Conv_BN_ReLU is implemented.

if __name__ == "__main__":
    key = jax.random.PRNGKey(0)
    kx, kw, kx2 = jax.random.split(key, 3)

    def ref_fn(x, weight, gamma, beta, rmean, rvar, eps=1e-5):
        co, ci = weight.shape[0], weight.shape[1]
        y = jnp.einsum("nchw,oc->nohw", x.astype(jnp.float32),
                       weight.reshape(co, ci))
        s = gamma / jnp.sqrt(rvar + eps)
        y = y * s[None, :, None, None] + (beta - rmean * s)[None, :, None, None]
        return jnp.maximum(y, 0.0)

    # --- test 1: f32 activations, 16x16 map (P = 256) ---------------------
    N, Cin, H, W = 2, 4, 16, 16
    Cout = 8
    x = jax.random.normal(kx, (N, Cin, H, W), jnp.float32)
    weight, gamma, beta, rmean, rvar = init_params(kw, Cin, Cout, kernel_size=1)
    # non-trivial BN stats so the scale/bias epilogue is actually exercised
    rmean = 0.1 * jnp.arange(Cout, dtype=jnp.float32)
    rvar = 1.0 + 0.05 * jnp.arange(Cout, dtype=jnp.float32)
    beta = 0.01 * jnp.arange(Cout, dtype=jnp.float32)

    out = jax.block_until_ready(conv_bn_relu(x, weight, gamma, beta, rmean, rvar))
    ref = ref_fn(x, weight, gamma, beta, rmean, rvar)
    assert out.shape == (N, Cout, H, W) and out.dtype == x.dtype
    assert jnp.allclose(out, ref, atol=2e-2, rtol=2e-2), \
        float(jnp.max(jnp.abs(out - ref)))

    # --- test 2: bf16 activations, 14x14 map (P = 196, not a multiple of 128)
    #             exercises the ragged lane dim, image batching, bf16 output.
    N2, Cin2, H2, W2, Cout2 = 3, 8, 14, 14, 16
    x2 = jax.random.normal(kx2, (N2, Cin2, H2, W2), jnp.float32)
    w2, g2, b2, rm2, rv2 = init_params(jax.random.PRNGKey(1), Cin2, Cout2)
    out2 = jax.block_until_ready(
        conv_bn_relu(x2.astype(jnp.bfloat16), w2, g2, b2, rm2, rv2))
    ref2 = ref_fn(x2, w2, g2, b2, rm2, rv2)
    assert out2.shape == (N2, Cout2, H2, W2) and out2.dtype == jnp.bfloat16
    assert jnp.allclose(out2.astype(jnp.float32), ref2, atol=1e-1, rtol=1e-1), \
        float(jnp.max(jnp.abs(out2.astype(jnp.float32) - ref2)))

    print("KERNEL_OK")
</pallas_src>

<mosaic_0001>
module attributes {stable_mosaic.version = 11 : i64} {
  func.func @_conv_bn_relu_kernel(%arg0: i32, %arg1: i32, %arg2: i32, %arg3: memref<2x4x256xf32, #tpu.memory_space<vmem>>, %arg4: memref<8x4xbf16, #tpu.memory_space<vmem>>, %arg5: memref<8x1xf32, #tpu.memory_space<vmem>>, %arg6: memref<8x1xf32, #tpu.memory_space<vmem>>, %arg7: memref<2x8x256xf32, #tpu.memory_space<vmem>>) attributes {dimension_semantics = [#tpu.dimension_semantics<parallel>, #tpu.dimension_semantics<parallel>, #tpu.dimension_semantics<parallel>], iteration_bounds = array<i64: 1, 1, 1>, scalar_prefetch = 0 : i64, scratch_operands = 0 : i64, tpu.core_type = #tpu.core_type<tc>, window_params = [{transform_indices = @transform_0, window_bounds = array<i64: 2, 4, 256>}, {pipeline_mode = #tpu.pipeline_mode<synchronous>, transform_indices = @transform_1, window_bounds = array<i64: 8, 4>}, {pipeline_mode = #tpu.pipeline_mode<synchronous>, transform_indices = @transform_2, window_bounds = array<i64: 8, 1>}, {pipeline_mode = #tpu.pipeline_mode<synchronous>, transform_indices = @transform_3, window_bounds = array<i64: 8, 1>}, {transform_indices = @transform_4, window_bounds = array<i64: 2, 8, 256>}]} {
    %c0 = arith.constant 0 : index
    %c0_0 = arith.constant 0 : index
    %0 = vector.load %arg4[%c0, %c0_0] : memref<8x4xbf16, #tpu.memory_space<vmem>>, vector<8x4xbf16>
    %c0_1 = arith.constant 0 : index
    %c0_2 = arith.constant 0 : index
    %1 = vector.load %arg5[%c0_1, %c0_2] : memref<8x1xf32, #tpu.memory_space<vmem>>, vector<8x1xf32>
    %c0_3 = arith.constant 0 : index
    %c0_4 = arith.constant 0 : index
    %2 = vector.load %arg6[%c0_3, %c0_4] : memref<8x1xf32, #tpu.memory_space<vmem>>, vector<8x1xf32>
    %c0_5 = arith.constant 0 : index
    %c0_6 = arith.constant 0 : index
    %c0_7 = arith.constant 0 : index
    %3 = vector.load %arg3[%c0_5, %c0_6, %c0_7] : memref<2x4x256xf32, #tpu.memory_space<vmem>>, vector<1x4x256xf32>
    %4 = vector.shape_cast %3 : vector<1x4x256xf32> to vector<4x256xf32>
    %5 = arith.truncf %4 : vector<4x256xf32> to vector<4x256xbf16>
    %cst = arith.constant dense<0.000000e+00> : vector<8x256xf32>
    %6 = tpu.matmul %0, %5, %cst {dimension_numbers = #tpu.dot_dimension_numbers<[1], [0], [0], [1], [0, 0, 1, 1], [], []>} : vector<8x4xbf16>, vector<4x256xbf16>, vector<8x256xf32> -> vector<8x256xf32>
    %7 = vector.broadcast %1 : vector<8x1xf32> to vector<8x256xf32>
    %8 = arith.mulf %6, %7 : vector<8x256xf32>
    %9 = vector.broadcast %2 : vector<8x1xf32> to vector<8x256xf32>
    %10 = arith.addf %8, %9 : vector<8x256xf32>
    %cst_8 = arith.constant 0.000000e+00 : f32
    %11 = vector.broadcast %cst_8 : f32 to vector<8x256xf32>
    %12 = arith.maximumf %10, %11 : vector<8x256xf32>
    %c0_9 = arith.constant 0 : index
    %c0_10 = arith.constant 0 : index
    %c0_11 = arith.constant 0 : index
    %13 = vector.load %arg7[%c0_9, %c0_10, %c0_11] : memref<2x8x256xf32, #tpu.memory_space<vmem>>, vector<1x8x256xf32>
    %14 = vector.shape_cast %13 : vector<1x8x256xf32> to vector<8x256xf32>
    %15 = vector.shape_cast %12 : vector<8x256xf32> to vector<1x8x256xf32>
    tpu.vector_store %arg7[%c0_9, %c0_10, %c0_11], %15 {strides = array<i32>} : memref<2x8x256xf32, #tpu.memory_space<vmem>>, vector<1x8x256xf32>,
    %c1 = arith.constant 1 : index
    %c0_12 = arith.constant 0 : index
    %c0_13 = arith.constant 0 : index
    %16 = vector.load %arg3[%c1, %c0_12, %c0_13] : memref<2x4x256xf32, #tpu.memory_space<vmem>>, vector<1x4x256xf32>
    %17 = vector.shape_cast %16 : vector<1x4x256xf32> to vector<4x256xf32>
    %18 = arith.truncf %17 : vector<4x256xf32> to vector<4x256xbf16>
    %cst_14 = arith.constant dense<0.000000e+00> : vector<8x256xf32>
    %19 = tpu.matmul %0, %18, %cst_14 {dimension_numbers = #tpu.dot_dimension_numbers<[1], [0], [0], [1], [0, 0, 1, 1], [], []>} : vector<8x4xbf16>, vector<4x256xbf16>, vector<8x256xf32> -> vector<8x256xf32>
    %20 = vector.broadcast %1 : vector<8x1xf32> to vector<8x256xf32>
    %21 = arith.mulf %19, %20 : vector<8x256xf32>
    %22 = vector.broadcast %2 : vector<8x1xf32> to vector<8x256xf32>
    %23 = arith.addf %21, %22 : vector<8x256xf32>
    %cst_15 = arith.constant 0.000000e+00 : f32
    %24 = vector.broadcast %cst_15 : f32 to vector<8x256xf32>
    %25 = arith.maximumf %23, %24 : vector<8x256xf32>
    %c1_16 = arith.constant 1 : index
    %c0_17 = arith.constant 0 : index
    %c0_18 = arith.constant 0 : index
    %26 = vector.load %arg7[%c1_16, %c0_17, %c0_18] : memref<2x8x256xf32, #tpu.memory_space<vmem>>, vector<1x8x256xf32>
    %27 = vector.shape_cast %26 : vector<1x8x256xf32> to vector<8x256xf32>
    %28 = vector.shape_cast %25 : vector<8x256xf32> to vector<1x8x256xf32>
    tpu.vector_store %arg7[%c1_16, %c0_17, %c0_18], %28 {strides = array<i32>} : memref<2x8x256xf32, #tpu.memory_space<vmem>>, vector<1x8x256xf32>,
    return
  }
  func.func @transform_0(%arg0: i32, %arg1: i32, %arg2: i32) -> (i32, i32, i32) {
    %c0_i32 = arith.constant 0 : i32
    %c0_i32_0 = arith.constant 0 : i32
    return %arg0, %c0_i32, %arg2 : i32, i32, i32
  }
  func.func @transform_1(%arg0: i32, %arg1: i32, %arg2: i32) -> (i32, i32) {
    %c0_i32 = arith.constant 0 : i32
    %c0_i32_0 = arith.constant 0 : i32
    return %arg1, %c0_i32 : i32, i32
  }
  func.func @transform_2(%arg0: i32, %arg1: i32, %arg2: i32) -> (i32, i32) {
    %c0_i32 = arith.constant 0 : i32
    %c0_i32_0 = arith.constant 0 : i32
    return %arg1, %c0_i32 : i32, i32
  }
  func.func @transform_3(%arg0: i32, %arg1: i32, %arg2: i32) -> (i32, i32) {
    %c0_i32 = arith.constant 0 : i32
    %c0_i32_0 = arith.constant 0 : i32
    return %arg1, %c0_i32 : i32, i32
  }
  func.func @transform_4(%arg0: i32, %arg1: i32, %arg2: i32) -> (i32, i32, i32) {
    %c0_i32 = arith.constant 0 : i32
    return %arg0, %arg1, %arg2 : i32, i32, i32
  }
}

module attributes {stable_mosaic.version = 11 : i64} {
  func.func @_conv_bn_relu_kernel(%arg0: i32, %arg1: i32, %arg2: i32, %arg3: memref<2x4x256xf32, #tpu.memory_space<vmem>>, %arg4: memref<8x4xbf16, #tpu.memory_space<vmem>>, %arg5: memref<8x1xf32, #tpu.memory_space<vmem>>, %arg6: memref<8x1xf32, #tpu.memory_space<vmem>>, %arg7: memref<2x8x256xf32, #tpu.memory_space<vmem>>) attributes {dimension_semantics = [#tpu.dimension_semantics<parallel>, #tpu.dimension_semantics<parallel>, #tpu.dimension_semantics<parallel>], iteration_bounds = array<i64: 1, 1, 1>, scalar_prefetch = 0 : i64, scratch_operands = 0 : i64, tpu.core_type = #tpu.core_type<tc>, window_params = [{transform_indices = @transform_0, window_bounds = array<i64: 2, 4, 256>}, {transform_indices = @transform_1, window_bounds = array<i64: 8, 4>}, {transform_indices = @transform_2, window_bounds = array<i64: 8, 1>}, {transform_indices = @transform_3, window_bounds = array<i64: 8, 1>}, {transform_indices = @transform_4, window_bounds = array<i64: 2, 8, 256>}]} {
    %c0 = arith.constant 0 : index
    %c0_0 = arith.constant 0 : index
    %0 = vector.load %arg4[%c0, %c0_0] : memref<8x4xbf16, #tpu.memory_space<vmem>>, vector<8x4xbf16>
    %c0_1 = arith.constant 0 : index
    %c0_2 = arith.constant 0 : index
    %1 = vector.load %arg5[%c0_1, %c0_2] : memref<8x1xf32, #tpu.memory_space<vmem>>, vector<8x1xf32>
    %c0_3 = arith.constant 0 : index
    %c0_4 = arith.constant 0 : index
    %2 = vector.load %arg6[%c0_3, %c0_4] : memref<8x1xf32, #tpu.memory_space<vmem>>, vector<8x1xf32>
    %c0_5 = arith.constant 0 : index
    %c0_6 = arith.constant 0 : index
    %c0_7 = arith.constant 0 : index
    %3 = vector.load %arg3[%c0_5, %c0_6, %c0_7] : memref<2x4x256xf32, #tpu.memory_space<vmem>>, vector<1x4x256xf32>
    %4 = vector.shape_cast %3 : vector<1x4x256xf32> to vector<4x256xf32>
    %5 = arith.truncf %4 : vector<4x256xf32> to vector<4x256xbf16>
    %cst = arith.constant dense<0.000000e+00> : vector<8x256xf32>
    %6 = tpu.matmul %0, %5, %cst {dimension_numbers = #tpu.dot_dimension_numbers<[1], [0], [0], [1], [0, 0, 1, 1], [], []>} : vector<8x4xbf16>, vector<4x256xbf16>, vector<8x256xf32> -> vector<8x256xf32>
    %7 = vector.broadcast %1 : vector<8x1xf32> to vector<8x256xf32>
    %8 = arith.mulf %6, %7 : vector<8x256xf32>
    %9 = vector.broadcast %2 : vector<8x1xf32> to vector<8x256xf32>
    %10 = arith.addf %8, %9 : vector<8x256xf32>
    %cst_8 = arith.constant 0.000000e+00 : f32
    %11 = vector.broadcast %cst_8 : f32 to vector<8x256xf32>
    %12 = arith.maximumf %10, %11 : vector<8x256xf32>
    %c0_9 = arith.constant 0 : index
    %c0_10 = arith.constant 0 : index
    %c0_11 = arith.constant 0 : index
    %13 = vector.load %arg7[%c0_9, %c0_10, %c0_11] : memref<2x8x256xf32, #tpu.memory_space<vmem>>, vector<1x8x256xf32>
    %14 = vector.shape_cast %13 : vector<1x8x256xf32> to vector<8x256xf32>
    %15 = vector.shape_cast %12 : vector<8x256xf32> to vector<1x8x256xf32>
    tpu.vector_store %arg7[%c0_9, %c0_10, %c0_11], %15 {strides = array<i32>} : memref<2x8x256xf32, #tpu.memory_space<vmem>>, vector<1x8x256xf32>,
    %c1 = arith.constant 1 : index
    %c0_12 = arith.constant 0 : index
    %c0_13 = arith.constant 0 : index
    %16 = vector.load %arg3[%c1, %c0_12, %c0_13] : memref<2x4x256xf32, #tpu.memory_space<vmem>>, vector<1x4x256xf32>
    %17 = vector.shape_cast %16 : vector<1x4x256xf32> to vector<4x256xf32>
    %18 = arith.truncf %17 : vector<4x256xf32> to vector<4x256xbf16>
    %cst_14 = arith.constant dense<0.000000e+00> : vector<8x256xf32>
    %19 = tpu.matmul %0, %18, %cst_14 {dimension_numbers = #tpu.dot_dimension_numbers<[1], [0], [0], [1], [0, 0, 1, 1], [], []>} : vector<8x4xbf16>, vector<4x256xbf16>, vector<8x256xf32> -> vector<8x256xf32>
    %20 = vector.broadcast %1 : vector<8x1xf32> to vector<8x256xf32>
    %21 = arith.mulf %19, %20 : vector<8x256xf32>
    %22 = vector.broadcast %2 : vector<8x1xf32> to vector<8x256xf32>
    %23 = arith.addf %21, %22 : vector<8x256xf32>
    %cst_15 = arith.constant 0.000000e+00 : f32
    %24 = vector.broadcast %cst_15 : f32 to vector<8x256xf32>
    %25 = arith.maximumf %23, %24 : vector<8x256xf32>
    %c1_16 = arith.constant 1 : index
    %c0_17 = arith.constant 0 : index
    %c0_18 = arith.constant 0 : index
    %26 = vector.load %arg7[%c1_16, %c0_17, %c0_18] : memref<2x8x256xf32, #tpu.memory_space<vmem>>, vector<1x8x256xf32>
    %27 = vector.shape_cast %26 : vector<1x8x256xf32> to vector<8x256xf32>
    %28 = vector.shape_cast %25 : vector<8x256xf32> to vector<1x8x256xf32>
    tpu.vector_store %arg7[%c1_16, %c0_17, %c0_18], %28 {strides = array<i32>} : memref<2x8x256xf32, #tpu.memory_space<vmem>>, vector<1x8x256xf32>,
    return
  }
  func.func @transform_0(%arg0: i32, %arg1: i32, %arg2: i32) -> (i32, i32, i32) {
    %c0_i32 = arith.constant 0 : i32
    %c0_i32_0 = arith.constant 0 : i32
    return %arg0, %c0_i32, %arg2 : i32, i32, i32
  }
  func.func @transform_1(%arg0: i32, %arg1: i32, %arg2: i32) -> (i32, i32) {
    %c0_i32 = arith.constant 0 : i32
    %c0_i32_0 = arith.constant 0 : i32
    return %arg1, %c0_i32 : i32, i32
  }
  func.func @transform_2(%arg0: i32, %arg1: i32, %arg2: i32) -> (i32, i32) {
    %c0_i32 = arith.constant 0 : i32
    %c0_i32_0 = arith.constant 0 : i32
    return %arg1, %c0_i32 : i32, i32
  }
  func.func @transform_3(%arg0: i32, %arg1: i32, %arg2: i32) -> (i32, i32) {
    %c0_i32 = arith.constant 0 : i32
    %c0_i32_0 = arith.constant 0 : i32
    return %arg1, %c0_i32 : i32, i32
  }
  func.func @transform_4(%arg0: i32, %arg1: i32, %arg2: i32) -> (i32, i32, i32) {
    %c0_i32 = arith.constant 0 : i32
    return %arg0, %arg1, %arg2 : i32, i32, i32
  }
}

</mosaic_0001>

<bundles_post_ra>
// kernel: tpu_custom_call.1
= control target key start
LH: loop header
LB: loop body
LE: loop exit
PB: predicated region body
PF: predicated region fallthrough
CT: control target
= control target key end

     0   :  { %vm32_vm0 = vcmask 1041408   ;;  %v211_v6 = vmov 0   ;;  %s262_s0 = inlined_call_operand.vmem [shape: f32[2,4,256], index: 0, kind: input, shape index: {}]   ;;  %s263_s1 = inlined_call_operand.vmem [shape: bf16[8,4], index: 1, kind: input, shape index: {}]   ;;  %s264_s2 = inlined_call_operand.vmem [shape: f32[8,1], index: 2, kind: input, shape index: {}]   ;;  %s265_s3 = inlined_call_operand.vmem [shape: f32[8,1], index: 3, kind: input, shape index: {}]   ;;  %s266_s4 = inlined_call_operand.hbm [shape: f32[2,8,256], index: 4, kind: output, shape index: {}]  }
   0x1   :  { %v22_v0 = vld [vmem:[%s262_s0] sm:$0xff]  ;;  %v179_v1 = vld [vmem:[%s262_s0 + $0x8] sm:$0xff]  ;;  %71 = vmatprep.mubr.bf16.mxu0 %v211_v6 }
   0x2   :  { %v24_v2 = vcombine.high %v22_v0, %v22_v0  ;;  %v101_v3 = vcombine.high %v179_v1, %v179_v1  ;;  %v26_v4 = vpack.c.bf16 %v22_v0, %v22_v0  ;;  %v103_v5 = vpack.c.bf16 %v179_v1, %v179_v1  ;;  %v20_v7 = vld [vmem:[%s264_s2] sm:$0xff] }
   0x3   :  { %9 = vsyncpa [#allocation3], 0  ;;  %143 = vmatprep.mubr.bf16.mxu1 %v211_v6  ;;  %186 = vset.pattern.permute.xlu0 %v211_v6  ;;  %v21_v12 = vld [vmem:[%s265_s3] sm:$0xff]  ;;  %vm28_vm1 = vcmask 31744   ;;  %s212_s3 = smov [#allocation2]  }
   0x4   :  { %v27_v8 = vpack.c.bf16 %v24_v2, %v24_v2  ;;  %v104_v9 = vpack.c.bf16 %v101_v3, %v101_v3  ;;  %v34_v10 = vsel %vm32_vm0, %v26_v4, 0  ;;  %v106_v11 = vsel %vm32_vm0, %v103_v5, 0  ;;  %82 = vperm.xlu0 %186, %v20_v7   ;;  %v19_v13 = vld [vmem:[%s263_s1] sm:$0xf]  ;;  %s166_s23 = sshll.u32 %s212_s3, 4  ;;  %s167_s23 = int_to_ptr.vmem [resolvable:$true] %s166_s23 }
   0x5   :  { %s189_s1 = scalar_lea.vmem %s167_s23, 512  ;;  %p194_p1 = scmp.lt.s32.totalorder %s167_s23, %s167_s23 }
   0x6   :  { %177 = vmatprep.subr.msk.bf16.mxu0 %vm32_vm0, %v27_v8  ;;  %180 = vmatprep.subr.msk.bf16.mxu1 %vm32_vm0, %v104_v9  ;;  %p190_p0 = scmp.ne.s32.totalorder %s167_s23, %s189_s1  ;;  %p195_p2 = scmp.lt.s32.totalorder %s189_s1, %s189_s1 }
   0x7   :  { %54 = vmatpush1.bf16.msra.mxu0 %v34_v10  ;;  %126 = vmatpush1.bf16.msra.mxu1 %v106_v11 }
   0x8   :  { %89 = vperm.xlu0 %186, %v21_v12   ;;  %p196_p3 = por %p195_p2, %p194_p1 }
   0xa   :  { %178 = vmatmul.mubr.msk.bf16.vlgmr.msra.gmra.mxu0 %vm28_vm1, %v19_v13  ;;  %181 = vmatmul.mubr.msk.bf16.vlgmr.msra.gmra.mxu1 %vm28_vm1, %v19_v13  ;;  %p197_p4 = pnand %p196_p3, %p190_p0 }
  0x7f   :  { %v83_v14 = vpop.permute.xlu0 %82 }
  0x83   :  { %v90_v17 = vpop.permute.xlu0 %89 }
  0xca   :  { %v73_v15 = vpop.f32.mrf.mxu0  ;;  %v145_v16 = vpop.f32.mrf.mxu1 }
  0xcb   :  { %v85_v18 = vmul.f32 %v83_v14, %v73_v15  ;;  %v152_v19 = vmul.f32 %v145_v16, %v83_v14 }
  0xcc   :  { %v75_v20 = vpop.f32.mrf.mxu0  ;;  %v147_v21 = vpop.f32.mrf.mxu1 }
  0xcd   :  { %v92_v22 = vadd.f32 %v90_v17, %v85_v18  ;;  %v154_v23 = vadd.f32 %v152_v19, %v90_v17  ;;  %v86_v24 = vmul.f32 %v83_v14, %v75_v20  ;;  %v153_v25 = vmul.f32 %v147_v21, %v83_v14 }
  0xce   :  { %v77_v26 = vpop.f32.mrf.mxu0  ;;  %v149_v27 = vpop.f32.mrf.mxu1 }
  0xcf   :  { %v94_v28 = vmax.f32 %v92_v22, 0.0  ;;  %v156_v29 = vmax.f32 %v154_v23, 0.0  ;;  %v93_v30 = vadd.f32 %v90_v17, %v86_v24  ;;  %v155_v31 = vadd.f32 %v153_v25, %v90_v17 }
  0xd0   :  { %v78_v32 = vpop.f32.mrf.mxu0  ;;  %v150_v33 = vpop.f32.mrf.mxu1 }
  0xd1   :  { %96 = vst [vmem:[#allocation2] sm:$0xff] %v94_v28  ;;  %159 = vst [vmem:[#allocation2 + $0x10] sm:$0xff] %v156_v29  ;;  %v95_v34 = vmax.f32 %v93_v30, 0.0  ;;  %v157_v35 = vmax.f32 %v155_v31, 0.0 }
  0xd3   :  { %97 = vst [vmem:[#allocation2 + $0x8] sm:$0xff] %v95_v34  ;;  %160 = vst [vmem:[#allocation2 + $0x18] sm:$0xff] %v157_v35 }
  0xd4   :  { %200 = shalt.err (!%p197_p4)
}
  0xd5   :  { %s213_s24 = smov 256   ;;  %s214_s25 = smov 16  }
  0xd6   :  { %172 = dma.vmem_to_hbm [thread:$0]  %s167_s23, 512, %s266_s4, [#allocation3], %s213_s24, %s213_s24, %s214_s25  }
  0xd7   :  { %209 = dma.done.wait [#allocation3], 512  }
  0xd8   :  { %210 = vsyncadd [#allocation3], 4294966784 }
  0xd9   :  { %176 = vsyncpa [#allocation3], 1 }

// kernel: tpu_custom_call.1
= control target key start
LH: loop header
LB: loop body
LE: loop exit
PB: predicated region body
PF: predicated region fallthrough
CT: control target
= control target key end

     0   :  { %vm32_vm0 = vcmask 1041408   ;;  %v211_v6 = vmov 0   ;;  %s262_s0 = inlined_call_operand.vmem [shape: f32[2,4,256], index: 0, kind: input, shape index: {}]   ;;  %s263_s1 = inlined_call_operand.vmem [shape: bf16[8,4], index: 1, kind: input, shape index: {}]   ;;  %s264_s2 = inlined_call_operand.vmem [shape: f32[8,1], index: 2, kind: input, shape index: {}]   ;;  %s265_s3 = inlined_call_operand.vmem [shape: f32[8,1], index: 3, kind: input, shape index: {}]   ;;  %s266_s4 = inlined_call_operand.hbm [shape: f32[2,8,256], index: 4, kind: output, shape index: {}]  }
   0x1   :  { %v22_v0 = vld [vmem:[%s262_s0] sm:$0xff]  ;;  %v179_v1 = vld [vmem:[%s262_s0 + $0x8] sm:$0xff]  ;;  %71 = vmatprep.mubr.bf16.mxu0 %v211_v6 }
   0x2   :  { %v24_v2 = vcombine.high %v22_v0, %v22_v0  ;;  %v101_v3 = vcombine.high %v179_v1, %v179_v1  ;;  %v26_v4 = vpack.c.bf16 %v22_v0, %v22_v0  ;;  %v103_v5 = vpack.c.bf16 %v179_v1, %v179_v1  ;;  %v20_v7 = vld [vmem:[%s264_s2] sm:$0xff] }
   0x3   :  { %9 = vsyncpa [#allocation3], 0  ;;  %143 = vmatprep.mubr.bf16.mxu1 %v211_v6  ;;  %186 = vset.pattern.permute.xlu0 %v211_v6  ;;  %v21_v12 = vld [vmem:[%s265_s3] sm:$0xff]  ;;  %vm28_vm1 = vcmask 31744   ;;  %s212_s3 = smov [#allocation2]  }
   0x4   :  { %v27_v8 = vpack.c.bf16 %v24_v2, %v24_v2  ;;  %v104_v9 = vpack.c.bf16 %v101_v3, %v101_v3  ;;  %v34_v10 = vsel %vm32_vm0, %v26_v4, 0  ;;  %v106_v11 = vsel %vm32_vm0, %v103_v5, 0  ;;  %82 = vperm.xlu0 %186, %v20_v7   ;;  %v19_v13 = vld [vmem:[%s263_s1] sm:$0xf]  ;;  %s166_s23 = sshll.u32 %s212_s3, 4  ;;  %s167_s23 = int_to_ptr.vmem [resolvable:$true] %s166_s23 }
   0x5   :  { %s189_s1 = scalar_lea.vmem %s167_s23, 512  ;;  %p194_p1 = scmp.lt.s32.totalorder %s167_s23, %s167_s23 }
   0x6   :  { %177 = vmatprep.subr.msk.bf16.mxu0 %vm32_vm0, %v27_v8  ;;  %180 = vmatprep.subr.msk.bf16.mxu1 %vm32_vm0, %v104_v9  ;;  %p190_p0 = scmp.ne.s32.totalorder %s167_s23, %s189_s1  ;;  %p195_p2 = scmp.lt.s32.totalorder %s189_s1, %s189_s1 }
   0x7   :  { %54 = vmatpush1.bf16.msra.mxu0 %v34_v10  ;;  %126 = vmatpush1.bf16.msra.mxu1 %v106_v11 }
   0x8   :  { %89 = vperm.xlu0 %186, %v21_v12   ;;  %p196_p3 = por %p195_p2, %p194_p1 }
   0xa   :  { %178 = vmatmul.mubr.msk.bf16.vlgmr.msra.gmra.mxu0 %vm28_vm1, %v19_v13  ;;  %181 = vmatmul.mubr.msk.bf16.vlgmr.msra.gmra.mxu1 %vm28_vm1, %v19_v13  ;;  %p197_p4 = pnand %p196_p3, %p190_p0 }
  0x7f   :  { %v83_v14 = vpop.permute.xlu0 %82 }
  0x83   :  { %v90_v17 = vpop.permute.xlu0 %89 }
  0xca   :  { %v73_v15 = vpop.f32.mrf.mxu0  ;;  %v145_v16 = vpop.f32.mrf.mxu1 }
  0xcb   :  { %v85_v18 = vmul.f32 %v83_v14, %v73_v15  ;;  %v152_v19 = vmul.f32 %v145_v16, %v83_v14 }
  0xcc   :  { %v75_v20 = vpop.f32.mrf.mxu0  ;;  %v147_v21 = vpop.f32.mrf.mxu1 }
  0xcd   :  { %v92_v22 = vadd.f32 %v90_v17, %v85_v18  ;;  %v154_v23 = vadd.f32 %v152_v19, %v90_v17  ;;  %v86_v24 = vmul.f32 %v83_v14, %v75_v20  ;;  %v153_v25 = vmul.f32 %v147_v21, %v83_v14 }
  0xce   :  { %v77_v26 = vpop.f32.mrf.mxu0  ;;  %v149_v27 = vpop.f32.mrf.mxu1 }
  0xcf   :  { %v94_v28 = vmax.f32 %v92_v22, 0.0  ;;  %v156_v29 = vmax.f32 %v154_v23, 0.0  ;;  %v93_v30 = vadd.f32 %v90_v17, %v86_v24  ;;  %v155_v31 = vadd.f32 %v153_v25, %v90_v17 }
  0xd0   :  { %v78_v32 = vpop.f32.mrf.mxu0  ;;  %v150_v33 = vpop.f32.mrf.mxu1 }
  0xd1   :  { %96 = vst [vmem:[#allocation2] sm:$0xff] %v94_v28  ;;  %159 = vst [vmem:[#allocation2 + $0x10] sm:$0xff] %v156_v29  ;;  %v95_v34 = vmax.f32 %v93_v30, 0.0  ;;  %v157_v35 = vmax.f32 %v155_v31, 0.0 }
  0xd3   :  { %97 = vst [vmem:[#allocation2 + $0x8] sm:$0xff] %v95_v34  ;;  %160 = vst [vmem:[#allocation2 + $0x18] sm:$0xff] %v157_v35 }
  0xd4   :  { %200 = shalt.err (!%p197_p4)
}
  0xd5   :  { %s213_s24 = smov 256   ;;  %s214_s25 = smov 16  }
  0xd6   :  { %172 = dma.vmem_to_hbm [thread:$0]  %s167_s23, 512, %s266_s4, [#allocation3], %s213_s24, %s213_s24, %s214_s25  }
  0xd7   :  { %209 = dma.done.wait [#allocation3], 512  }
  0xd8   :  { %210 = vsyncadd [#allocation3], 4294966784 }
  0xd9   :  { %176 = vsyncpa [#allocation3], 1 }

</bundles_post_ra>
